<compile_context>
chip_gen: v7x
topology: tpu7x:2x2x1
jax: 0.10.0
libtpu: 0.0.40
codegen_flags: <defaults>
</compile_context>

<pallas_src>
import jax
import jax.numpy as jnp
from jax import lax
from jax.experimental import pallas as pl

# Small, self-consistent sizes (module implies T <= block_size, C = n_embd,
# head_size = n_embd // num_heads).
N_EMBD = 32
NUM_HEADS = 4
HEAD_SIZE = N_EMBD // NUM_HEADS
SEQ = 8
BATCH = 2

_ROWS = BATCH * SEQ            # B*T = 16
_GROUP = 4                     # rows packed side-by-side per lane-dense slab row
_NGROUPS = _ROWS // _GROUP     # 4  -> slab lane width = _NGROUPS * N_EMBD = 128


# ---------------------------------------------------------------------------
# Fused kernel: QKV + batched per-(head,batch) causal attention + concat + proj
# ---------------------------------------------------------------------------
def _mha_fused_kernel(x_ref, wqkv_ref, wproj_ref, bproj_ref, o_ref):
    """Full MultiHeadAttention forward for the whole (B, T) problem in one step.

    x_ref    : (B*T, C)
    wqkv_ref : (C, 3*C)  columns = [q heads | k heads | v heads]; the module's
                         C**-0.5 softmax scale is pre-folded into the q columns
    wproj_ref: (C, C)    stored (in, out): kernel does cat @ W + b
    bproj_ref: (1, C)
    o_ref    : (_GROUP, _NGROUPS*C) lane-dense slab;
               o[r, m*C + c] == y[m*_GROUP + r, c]  with y the (B*T, C) result
    """
    x = x_ref[...]                                               # (16, 32)

    # One fused QKV matmul for all heads AND the whole batch.
    qkv = jnp.dot(x, wqkv_ref[...],
                  preferred_element_type=jnp.float32)            # (16, 96)
    qkv3 = qkv.reshape(BATCH, SEQ, 3 * N_EMBD)                   # (2, 8, 96) major-dim split

    # Stack per-(head, batch) q/k/v along a leading batch dim: (H*B, T, Hs).
    def gather_heads(base):
        parts = [qkv3[:, :, base + h * HEAD_SIZE: base + (h + 1) * HEAD_SIZE]
                 for h in range(NUM_HEADS)]                      # each (B, T, Hs)
        return jnp.concatenate(parts, axis=0)                    # (H*B, T, Hs)

    q3 = gather_heads(0)               # softmax scale already folded into wq
    k3 = gather_heads(N_EMBD)
    v3 = gather_heads(2 * N_EMBD)

    # Batched QK^T over all (head, batch) pairs in one dot_general;
    # contraction on the head dim of both operands -> no materialized k.T.
    s = jnp.einsum('ztd,zsd->zts', q3, k3,
                   preferred_element_type=jnp.float32)           # (H*B, T, T)

    # Shared causal mask; large finite negative avoids any -inf/NaN hazard.
    row = lax.broadcasted_iota(jnp.int32, (SEQ, SEQ), 0)
    col = lax.broadcasted_iota(jnp.int32, (SEQ, SEQ), 1)
    s = jnp.where((col <= row)[None, :, :], s, jnp.float32(-1e30))

    # Single softmax instruction stream over all (head, batch) pairs.
    s = s - jnp.max(s, axis=-1, keepdims=True)
    e = jnp.exp(s)
    denom = jnp.sum(e, axis=-1, keepdims=True)
    r = pl.reciprocal(denom, approx=True)                        # EUP vrcp slot
    r = r * (2.0 - denom * r)                                    # one Newton step -> ~f32 accurate
    p = e * r
    # TODO(synk): attention-weight dropout omitted (eval/inference -> identity).

    # Batched PV over all (head, batch) pairs.
    o3 = jnp.einsum('zts,zsd->ztd', p, v3,
                    preferred_element_type=jnp.float32)          # (H*B, T, Hs)

    # Concat heads back over channels -> (B*T, C), then output projection.
    cat = jnp.concatenate(
        [o3[h * BATCH:(h + 1) * BATCH] for h in range(NUM_HEADS)],
        axis=-1)                                                 # (B, T, C)
    cat2 = cat.reshape(_ROWS, N_EMBD)                            # (16, 32) major-dim merge
    y = jnp.dot(cat2, wproj_ref[...],
                preferred_element_type=jnp.float32) + bproj_ref[...]
    # TODO(synk): post-projection dropout omitted (eval/inference -> identity).

    # Lane-dense store: pack contiguous 4-row blocks of y side by side so the
    # slab's last dim is 128 (unmasked vector stores); wrapper un-permutes.
    o_ref[...] = jnp.concatenate(
        [y[m * _GROUP:(m + 1) * _GROUP, :] for m in range(_NGROUPS)], axis=1)


# ---------------------------------------------------------------------------
# Wrapper
# ---------------------------------------------------------------------------
def multi_head_attention(x, fused_params):
    """Forward pass equivalent to MultiHeadAttention.forward (eval mode)."""
    wqkv, w_proj_t, b_proj = fused_params
    B, T, C = x.shape
    rows = B * T
    n_groups = rows // _GROUP

    slab = pl.pallas_call(
        _mha_fused_kernel,
        out_shape=jax.ShapeDtypeStruct((_GROUP, n_groups * C), jnp.float32),
        # No grid: the whole (tiny) problem is one step; every operand is a
        # single full-array VMEM block.  TODO(synk): at the module's real
        # sizes (T=256, C=384) reintroduce a KV-tiled flash-style grid, bf16
        # MXU operands, and size tiles against v7x's 64 MiB VMEM
        # (vmem_limit_bytes).
    )(x.reshape(rows, C), wqkv, w_proj_t, b_proj)

    # Undo the lane-dense grouping: slab[r, m*C + c] == y[m*_GROUP + r, c].
    y = slab.reshape(_GROUP, n_groups, C).transpose(1, 0, 2).reshape(rows, C)
    return y.reshape(B, T, C)


# ---------------------------------------------------------------------------
# Parameter init (deterministic, PyTorch-Linear-style uniform) + weight fusion
# ---------------------------------------------------------------------------
def init_params(key):
    ks = jax.random.split(key, 5)
    bound = 1.0 / jnp.sqrt(jnp.float32(N_EMBD))
    wq = jax.random.uniform(ks[0], (NUM_HEADS, N_EMBD, HEAD_SIZE),
                            jnp.float32, -bound, bound)
    wk = jax.random.uniform(ks[1], (NUM_HEADS, N_EMBD, HEAD_SIZE),
                            jnp.float32, -bound, bound)
    wv = jax.random.uniform(ks[2], (NUM_HEADS, N_EMBD, HEAD_SIZE),
                            jnp.float32, -bound, bound)
    # proj weight stored pre-transposed as (in, out) so the kernel does x @ W + b
    w_proj_t = jax.random.uniform(ks[3], (N_EMBD, N_EMBD),
                                  jnp.float32, -bound, bound)
    b_proj = jax.random.uniform(ks[4], (1, N_EMBD),
                                jnp.float32, -bound, bound)
    return wq, wk, wv, w_proj_t, b_proj


def fuse_qkv(wq, wk, wv):
    """(H, C, Hs) per-head weights -> single (C, 3*C) fused QKV matrix.

    The module's softmax scale C**-0.5 (C = n_embd, matching the PyTorch code)
    is folded into the Q columns here — a one-time host-side weight fold, so
    the kernel never multiplies the (T, T) scores by a scalar.
    """
    def stack(w):  # head h occupies columns [h*Hs, (h+1)*Hs)
        return jnp.transpose(w, (1, 0, 2)).reshape(N_EMBD, NUM_HEADS * HEAD_SIZE)
    scale = jnp.float32(N_EMBD) ** jnp.float32(-0.5)
    return jnp.concatenate([stack(wq) * scale, stack(wk), stack(wv)], axis=-1)


# ---------------------------------------------------------------------------
# Pure-JAX reference (mirrors the PyTorch module head-by-head)
# ---------------------------------------------------------------------------
def reference(x, params):
    wq, wk, wv, w_proj_t, b_proj = params
    B, T, C = x.shape
    mask = jnp.tril(jnp.ones((T, T), dtype=bool))
    outs = []
    for h in range(NUM_HEADS):
        k = x @ wk[h]
        q = x @ wq[h]
        v = x @ wv[h]
        wei = (q @ jnp.swapaxes(k, -2, -1)) * (C ** -0.5)
        wei = jnp.where(mask, wei, -jnp.inf)
        wei = jax.nn.softmax(wei, axis=-1)
        outs.append(wei @ v)
    cat = jnp.concatenate(outs, axis=-1)
    return cat @ w_proj_t + b_proj[0]


if __name__ == "__main__":
    key = jax.random.PRNGKey(0)
    k_x, k_p = jax.random.split(key)
    x = jax.random.normal(k_x, (BATCH, SEQ, N_EMBD), jnp.float32)
    wq, wk, wv, w_proj_t, b_proj = init_params(k_p)
    wqkv = fuse_qkv(wq, wk, wv)

    out = multi_head_attention(x, (wqkv, w_proj_t, b_proj))
    out = jax.block_until_ready(out)

    ref = reference(x, (wq, wk, wv, w_proj_t, b_proj))
    assert out.shape == (BATCH, SEQ, N_EMBD)
    # Newton-refined reciprocal restores ~f32 accuracy -> tight tolerance.
    assert jnp.allclose(out, ref, atol=1e-4, rtol=1e-4), "mismatch vs JAX reference"

    print("KERNEL_OK")
</pallas_src>

<mosaic_0001>
module attributes {stable_mosaic.version = 11 : i64} {
  func.func @_mha_fused_kernel(%arg0: memref<16x32xf32, #tpu.memory_space<vmem>>, %arg1: memref<32x96xf32, #tpu.memory_space<vmem>>, %arg2: memref<32x32xf32, #tpu.memory_space<vmem>>, %arg3: memref<1x32xf32, #tpu.memory_space<vmem>>, %arg4: memref<4x128xf32, #tpu.memory_space<vmem>>) attributes {dimension_semantics = [], scalar_prefetch = 0 : i64, scratch_operands = 0 : i64, tpu.core_type = #tpu.core_type<tc>} {
    %c0 = arith.constant 0 : index
    %c0_0 = arith.constant 0 : index
    %0 = vector.load %arg0[%c0, %c0_0] : memref<16x32xf32, #tpu.memory_space<vmem>>, vector<16x32xf32>
    %c0_1 = arith.constant 0 : index
    %c0_2 = arith.constant 0 : index
    %1 = vector.load %arg1[%c0_1, %c0_2] : memref<32x96xf32, #tpu.memory_space<vmem>>, vector<32x96xf32>
    %cst = arith.constant dense<0.000000e+00> : vector<16x96xf32>
    %2 = tpu.matmul %0, %1, %cst {dimension_numbers = #tpu.dot_dimension_numbers<[1], [0], [0], [1], [0, 0, 1, 1], [], []>} : vector<16x32xf32>, vector<32x96xf32>, vector<16x96xf32> -> vector<16x96xf32>
    %3 = vector.shape_cast %2 : vector<16x96xf32> to vector<2x8x96xf32>
    %4 = vector.extract_strided_slice %3 {offsets = [0, 0, 0], sizes = [2, 8, 8], strides = [1, 1, 1]} : vector<2x8x96xf32> to vector<2x8x8xf32>
    %5 = vector.extract_strided_slice %3 {offsets = [0, 0, 8], sizes = [2, 8, 8], strides = [1, 1, 1]} : vector<2x8x96xf32> to vector<2x8x8xf32>
    %6 = vector.extract_strided_slice %3 {offsets = [0, 0, 16], sizes = [2, 8, 8], strides = [1, 1, 1]} : vector<2x8x96xf32> to vector<2x8x8xf32>
    %7 = vector.extract_strided_slice %3 {offsets = [0, 0, 24], sizes = [2, 8, 8], strides = [1, 1, 1]} : vector<2x8x96xf32> to vector<2x8x8xf32>
    %8 = tpu.concatenate %4, %5, %6, %7 in 0 : vector<2x8x8xf32>, vector<2x8x8xf32>, vector<2x8x8xf32>, vector<2x8x8xf32> -> vector<8x8x8xf32>
    %9 = vector.extract_strided_slice %3 {offsets = [0, 0, 32], sizes = [2, 8, 8], strides = [1, 1, 1]} : vector<2x8x96xf32> to vector<2x8x8xf32>
    %10 = vector.extract_strided_slice %3 {offsets = [0, 0, 40], sizes = [2, 8, 8], strides = [1, 1, 1]} : vector<2x8x96xf32> to vector<2x8x8xf32>
    %11 = vector.extract_strided_slice %3 {offsets = [0, 0, 48], sizes = [2, 8, 8], strides = [1, 1, 1]} : vector<2x8x96xf32> to vector<2x8x8xf32>
    %12 = vector.extract_strided_slice %3 {offsets = [0, 0, 56], sizes = [2, 8, 8], strides = [1, 1, 1]} : vector<2x8x96xf32> to vector<2x8x8xf32>
    %13 = tpu.concatenate %9, %10, %11, %12 in 0 : vector<2x8x8xf32>, vector<2x8x8xf32>, vector<2x8x8xf32>, vector<2x8x8xf32> -> vector<8x8x8xf32>
    %14 = vector.extract_strided_slice %3 {offsets = [0, 0, 64], sizes = [2, 8, 8], strides = [1, 1, 1]} : vector<2x8x96xf32> to vector<2x8x8xf32>
    %15 = vector.extract_strided_slice %3 {offsets = [0, 0, 72], sizes = [2, 8, 8], strides = [1, 1, 1]} : vector<2x8x96xf32> to vector<2x8x8xf32>
    %16 = vector.extract_strided_slice %3 {offsets = [0, 0, 80], sizes = [2, 8, 8], strides = [1, 1, 1]} : vector<2x8x96xf32> to vector<2x8x8xf32>
    %17 = vector.extract_strided_slice %3 {offsets = [0, 0, 88], sizes = [2, 8, 8], strides = [1, 1, 1]} : vector<2x8x96xf32> to vector<2x8x8xf32>
    %18 = tpu.concatenate %14, %15, %16, %17 in 0 : vector<2x8x8xf32>, vector<2x8x8xf32>, vector<2x8x8xf32>, vector<2x8x8xf32> -> vector<8x8x8xf32>
    "tpu.trace_start"() <{level = 10 : i32, message = "ztd,zsd->zts"}> : () -> ()
    %cst_3 = arith.constant dense<0.000000e+00> : vector<8x8x8xf32>
    %19 = tpu.matmul %8, %13, %cst_3 {dimension_numbers = #tpu.dot_dimension_numbers<[2], [2], [1], [1], [0, 0, 0, 1, 1, 1], [0], [0]>} : vector<8x8x8xf32>, vector<8x8x8xf32>, vector<8x8x8xf32> -> vector<8x8x8xf32>
    "tpu.trace_stop"() : () -> ()
    %20 = tpu.iota {dimensions = array<i32: 0>} : vector<8x8xi32>
    %21 = tpu.iota {dimensions = array<i32: 1>} : vector<8x8xi32>
    %22 = arith.cmpi sle, %21, %20 : vector<8x8xi32>
    %23 = vector.shape_cast %22 : vector<8x8xi1> to vector<1x8x8xi1>
    %cst_4 = arith.constant -1.000000e+30 : f32
    %24 = vector.shape_cast %23 : vector<1x8x8xi1> to vector<1x8x8xi1>
    %25 = vector.broadcast %24 : vector<1x8x8xi1> to vector<8x8x8xi1>
    %26 = vector.broadcast %cst_4 : f32 to vector<8x8x8xf32>
    %27 = arith.select %25, %19, %26 : vector<8x8x8xi1>, vector<8x8x8xf32>
    %cst_5 = arith.constant dense<0xFF800000> : vector<8x8xf32>
    %28 = vector.multi_reduction <maximumf>, %27, %cst_5 [2] : vector<8x8x8xf32> to vector<8x8xf32>
    %29 = vector.shape_cast %28 : vector<8x8xf32> to vector<8x8x1xf32>
    %30 = vector.broadcast %29 : vector<8x8x1xf32> to vector<8x8x8xf32>
    %31 = arith.subf %27, %30 : vector<8x8x8xf32>
    %32 = math.exp %31 : vector<8x8x8xf32>
    %cst_6 = arith.constant dense<0.000000e+00> : vector<8x8xf32>
    %33 = vector.multi_reduction <add>, %32, %cst_6 [2] : vector<8x8x8xf32> to vector<8x8xf32>
    %34 = vector.shape_cast %33 : vector<8x8xf32> to vector<8x8x1xf32>
    %35 = tpu.reciprocal %34 {approx = true} : vector<8x8x1xf32> -> vector<8x8x1xf32>
    %36 = arith.mulf %34, %35 : vector<8x8x1xf32>
    %cst_7 = arith.constant 2.000000e+00 : f32
    %37 = vector.broadcast %cst_7 : f32 to vector<8x8x1xf32>
    %38 = arith.subf %37, %36 : vector<8x8x1xf32>
    %39 = arith.mulf %35, %38 : vector<8x8x1xf32>
    %40 = vector.broadcast %39 : vector<8x8x1xf32> to vector<8x8x8xf32>
    %41 = arith.mulf %32, %40 : vector<8x8x8xf32>
    "tpu.trace_start"() <{level = 10 : i32, message = "zts,zsd->ztd"}> : () -> ()
    %cst_8 = arith.constant dense<0.000000e+00> : vector<8x8x8xf32>
    %42 = tpu.matmul %41, %18, %cst_8 {dimension_numbers = #tpu.dot_dimension_numbers<[2], [1], [1], [2], [0, 0, 0, 1, 1, 2], [0], [0]>} : vector<8x8x8xf32>, vector<8x8x8xf32>, vector<8x8x8xf32> -> vector<8x8x8xf32>
    "tpu.trace_stop"() : () -> ()
    %43 = vector.extract_strided_slice %42 {offsets = [0, 0, 0], sizes = [2, 8, 8], strides = [1, 1, 1]} : vector<8x8x8xf32> to vector<2x8x8xf32>
    %44 = vector.extract_strided_slice %42 {offsets = [2, 0, 0], sizes = [2, 8, 8], strides = [1, 1, 1]} : vector<8x8x8xf32> to vector<2x8x8xf32>
    %45 = vector.extract_strided_slice %42 {offsets = [4, 0, 0], sizes = [2, 8, 8], strides = [1, 1, 1]} : vector<8x8x8xf32> to vector<2x8x8xf32>
    %46 = vector.extract_strided_slice %42 {offsets = [6, 0, 0], sizes = [2, 8, 8], strides = [1, 1, 1]} : vector<8x8x8xf32> to vector<2x8x8xf32>
    %47 = tpu.concatenate %43, %44, %45, %46 in 2 : vector<2x8x8xf32>, vector<2x8x8xf32>, vector<2x8x8xf32>, vector<2x8x8xf32> -> vector<2x8x32xf32>
    %48 = vector.shape_cast %47 : vector<2x8x32xf32> to vector<16x32xf32>
    %c0_9 = arith.constant 0 : index
    %c0_10 = arith.constant 0 : index
    %49 = vector.load %arg2[%c0_9, %c0_10] : memref<32x32xf32, #tpu.memory_space<vmem>>, vector<32x32xf32>
    %cst_11 = arith.constant dense<0.000000e+00> : vector<16x32xf32>
    %50 = tpu.matmul %48, %49, %cst_11 {dimension_numbers = #tpu.dot_dimension_numbers<[1], [0], [0], [1], [0, 0, 1, 1], [], []>} : vector<16x32xf32>, vector<32x32xf32>, vector<16x32xf32> -> vector<16x32xf32>
    %c0_12 = arith.constant 0 : index
    %c0_13 = arith.constant 0 : index
    %51 = vector.load %arg3[%c0_12, %c0_13] : memref<1x32xf32, #tpu.memory_space<vmem>>, vector<1x32xf32>
    %52 = vector.broadcast %51 : vector<1x32xf32> to vector<16x32xf32>
    %53 = arith.addf %50, %52 : vector<16x32xf32>
    %54 = vector.extract_strided_slice %53 {offsets = [0, 0], sizes = [4, 32], strides = [1, 1]} : vector<16x32xf32> to vector<4x32xf32>
    %55 = vector.extract_strided_slice %53 {offsets = [4, 0], sizes = [4, 32], strides = [1, 1]} : vector<16x32xf32> to vector<4x32xf32>
    %56 = vector.extract_strided_slice %53 {offsets = [8, 0], sizes = [4, 32], strides = [1, 1]} : vector<16x32xf32> to vector<4x32xf32>
    %57 = vector.extract_strided_slice %53 {offsets = [12, 0], sizes = [4, 32], strides = [1, 1]} : vector<16x32xf32> to vector<4x32xf32>
    %58 = tpu.concatenate %54, %55, %56, %57 in 1 : vector<4x32xf32>, vector<4x32xf32>, vector<4x32xf32>, vector<4x32xf32> -> vector<4x128xf32>
    %c0_14 = arith.constant 0 : index
    %c0_15 = arith.constant 0 : index
    %59 = vector.load %arg4[%c0_14, %c0_15] : memref<4x128xf32, #tpu.memory_space<vmem>>, vector<4x128xf32>
    tpu.vector_store %arg4[%c0_14, %c0_15], %58 {strides = array<i32>} : memref<4x128xf32, #tpu.memory_space<vmem>>, vector<4x128xf32>,
    return
  }
}

</mosaic_0001>

<bundles_post_ra>
// kernel: tpu_custom_call.1
= control target key start
LH: loop header
LB: loop body
LE: loop exit
PB: predicated region body
PF: predicated region fallthrough
CT: control target
= control target key end

     0   :  { %9 = vsyncpa [#allocation3], 0  ;;  %s2321_s0 = inlined_call_operand.hbm [shape: f32[16,32], index: 0, kind: input, shape index: {}]   ;;  %s2322_s1 = inlined_call_operand.hbm [shape: f32[32,96], index: 1, kind: input, shape index: {}]   ;;  %s2323_s2 = inlined_call_operand.hbm [shape: f32[32,32], index: 2, kind: input, shape index: {}]   ;;  %s2324_s3 = inlined_call_operand.vmem [shape: f32[1,32], index: 3, kind: input, shape index: {}]   ;;  %s2325_s4 = inlined_call_operand.hbm [shape: f32[4,128], index: 4, kind: output, shape index: {}]  }
   0x1   :  { %10 = vsyncpa [#allocation6], 0 }
   0x2   :  { %11 = vsyncpa [#allocation4], 0  ;;  %s1997_s15 = smov [#allocation5]   ;;  %s1998_s17 = smov [#allocation2]  }
   0x3   :  { %s29_s16 = sshll.u32 %s1997_s15, 4  ;;  %s17_s18 = sshll.u32 %s1998_s17, 4  ;;  %s30_s16 = int_to_ptr.vmem [resolvable:$true] %s29_s16  ;;  %s2038_s18 = int_to_ptr.vmem [resolvable:$true] %s17_s18 }
   0x4   :  { %s1903_s21 = scalar_lea.hbm %s2322_s1, 512 }
   0x5   :  { %p1904_p0 = scmp.ne.s32.totalorder %s2322_s1, %s1903_s21  ;;  %p1907_p1 = scmp.lt.u32.totalorder %s1903_s21, %s2322_s1 }
   0x7   :  { %p1909_p2 = pnand %p1907_p1, %p1904_p0 }
   0x9   :  { %1912 = shalt.err (!%p1909_p2)
}
   0xa   :  { %s1913_s26 = scalar_lea.vmem %s30_s16, 512  ;;  %p1918_p4 = scmp.lt.s32.totalorder %s30_s16, %s30_s16 }
   0xb   :  { %p1914_p3 = scmp.ne.s32.totalorder %s30_s16, %s1913_s26  ;;  %p1919_p5 = scmp.lt.s32.totalorder %s1913_s26, %s1913_s26 }
   0xd   :  { %p1920_p6 = por %p1919_p5, %p1918_p4 }
   0xf   :  { %p1921_p7 = pnand %p1920_p6, %p1914_p3 }
  0x11   :  { %1924 = shalt.err (!%p1921_p7)
}
  0x12   :  { %s1999_s27 = smov 128   ;;  %s2000_s28 = smov 8  }
  0x13   :  { %35 = dma.hbm_to_vmem [thread:$0]  %s2322_s1, 512, %s30_s16, [#allocation6], %s1999_s27, %s1999_s27, %s2000_s28  }
  0x14   :  { %s1925_s7 = scalar_lea.hbm %s2321_s0, 256 }
  0x15   :  { %p1926_p8 = scmp.ne.s32.totalorder %s2321_s0, %s1925_s7  ;;  %p1929_p9 = scmp.lt.u32.totalorder %s1925_s7, %s2321_s0 }
  0x17   :  { %p1931_p10 = pnand %p1929_p9, %p1926_p8 }
  0x19   :  { %1934 = shalt.err (!%p1931_p10)
}
  0x1a   :  { %s1935_s12 = scalar_lea.vmem %s2038_s18, 256  ;;  %p1940_p12 = scmp.lt.s32.totalorder %s2038_s18, %s2038_s18 }
  0x1b   :  { %p1936_p11 = scmp.ne.s32.totalorder %s2038_s18, %s1935_s12  ;;  %p1941_p13 = scmp.lt.s32.totalorder %s1935_s12, %s1935_s12 }
  0x1d   :  { %p1942_p0 = por %p1941_p13, %p1940_p12 }
  0x1f   :  { %p1943_p1 = pnand %p1942_p0, %p1936_p11 }
  0x21   :  { %1946 = shalt.err (!%p1943_p1)
}
  0x22   :  { %23 = dma.hbm_to_vmem [thread:$0]  %s2321_s0, 256, %s2038_s18, [#allocation3], %s1999_s27, %s1999_s27, %s2000_s28  }
  0x23   :  { %s2001_s14 = smov [#allocation7]   ;;  %s1947_s19 = scalar_lea.hbm %s2323_s2, 512 }
  0x24   :  { %s41_s15 = sshll.u32 %s2001_s14, 4  ;;  %p1948_p2 = scmp.ne.s32.totalorder %s2323_s2, %s1947_s19  ;;  %s42_s15 = int_to_ptr.vmem [resolvable:$true] %s41_s15 }
  0x25   :  { %p1951_p3 = scmp.lt.u32.totalorder %s1947_s19, %s2323_s2 }
  0x27   :  { %p1953_p4 = pnand %p1951_p3, %p1948_p2 }
  0x29   :  { %1956 = shalt.err (!%p1953_p4)
}
  0x2a   :  { %s1957_s24 = scalar_lea.vmem %s42_s15, 512  ;;  %p1962_p6 = scmp.lt.s32.totalorder %s42_s15, %s42_s15 }
  0x2b   :  { %p1958_p5 = scmp.ne.s32.totalorder %s42_s15, %s1957_s24  ;;  %p1963_p7 = scmp.lt.s32.totalorder %s1957_s24, %s1957_s24 }
  0x2d   :  { %p1964_p8 = por %p1963_p7, %p1962_p6 }
  0x2f   :  { %p1965_p9 = pnand %p1964_p8, %p1958_p5 }
  0x31   :  { %1968 = shalt.err (!%p1965_p9)
}
  0x32   :  { %47 = dma.hbm_to_vmem [thread:$0]  %s2323_s2, 512, %s42_s15, [#allocation6], %s1999_s27, %s1999_s27, %s2000_s28  }
  0x33   :  { %1991 = dma.done.wait [#allocation3], 256  }
  0x34   :  { %1992 = vsyncadd [#allocation3], 4294967040 }
  0x35   :  { %1993 = dma.done.wait [#allocation6], 1024  }
  0x36   :  { %1994 = vsyncadd [#allocation6], 4294966272  ;;  %vm65_vm0 = vcmask 261120   ;;  %v61_v0 = vld [vmem:[#allocation5] sm:$0xff]  ;;  %v62_v1 = vld [vmem:[#allocation5 + $0x8] sm:$0xff]  ;;  %v2002_v8 = vmov 0.0   ;;  %v770_v25 = vlaneseq }
  0x37   :  { %v63_v2 = vld [vmem:[#allocation5 + $0x10] sm:$0xff]  ;;  %v1839_v3 = vpack.c.bf16 %v62_v1, %v61_v0  ;;  %v64_v4 = vld [vmem:[#allocation5 + $0x18] sm:$0xff]  ;;  %1748 = vmatprep.subr.mxu1 %v2002_v8  ;;  %s2003_s2 = smov 112   ;;  %s2004_s25 = smov 120   ;;  %vm2005_vm1 = vmmov 0   ;;  %vm163_vm2 = vcmask 64512  }
  0x38   :  { %v59_v5 = vld [vmem:[#allocation2] sm:$0xff]  ;;  %v1843_v6 = vpack.c.bf16 %v64_v4, %v63_v2  ;;  %v60_v7 = vld [vmem:[#allocation2 + $0x8] sm:$0xff]  ;;  %1750 = vmatprep.mubr.msk.f32.mxu1 %vm2005_vm1, %v2002_v8  ;;  %s2006_s26 = smov 104   ;;  %s2007_s27 = smov 96   ;;  %v771_v26 = vshrl.u32 %v770_v25, 7  ;;  %v773_v27 = vand.u32 127, %v770_v25 }
  0x39   :  { %1745 = vmatprep.mubr.msk.f32.mxu0 %vm65_vm0, %v59_v5  ;;  %1840 = vmatprep.subr.bf16.mxu0 %v1839_v3  ;;  %s2008_s29 = smov 64   ;;  %s2009_s30 = smov 16   ;;  %vm1531_vm4 = vcmask 130048   ;;  %vm1534_vm5 = vcmask 195584   ;;  %vm1643_vm6 = vcmask 523264   ;;  %vm1645_vm7 = vcmask 785408  }
  0x3a   :  { %1842 = vmatpush3.bf16.msra.mxu0 %v1839_v3  ;;  %vm2184_vm3 = vcmp.le.s32.totalorder %v773_v27, %v771_v26  ;;  %s2010_s5 = smov 24   ;;  %s2011_s7 = smov 32  }
  0x3b   :  { %1844 = vmatprep.subr.bf16.mxu0 %v1843_v6  ;;  %s2012_s8 = smov [#allocation8]  }
  0x3c   :  { %s1654_s9 = sshll.u32 %s2012_s8, 4  ;;  %s1655_s9 = int_to_ptr.vmem [resolvable:$true] %s1654_s9 }
  0x3d   :  { %p1974_p11 = scmp.lt.s32.totalorder %s1655_s9, %s1655_s9 }
  0x3e   :  { %1846 = vmatpush3.bf16.msra.mxu0 %v1843_v6 }
  0x3f   :  { %1768 = vmatprep.subr.mxu0 %v2002_v8 }
  0x41   :  { %1746 = vmatmul.mubr.msk.f32.vlgmr.msra.gmra.mrb[0].mxu0 %vm65_vm0, %v60_v7 }
  0x42   :  { %1770 = vmatprep.mubr.msk.f32.mxu0 %vm2005_vm1, %v2002_v8 }
 0x114   :  { %v2094_v9 = vpop.f32.mrb[0].mxu0 }
 0x115   :  { %v2096_v10 = vpop.f32.mrb[1].mxu0 }
 0x116   :  { %153 = vrot.lane.b32.xlu1 %v2096_v10, %s2003_s2  ;;  %149 = vrot.lane.b32.xlu0 %v2096_v10, %s2004_s25 }
 0x11a   :  { %155 = vrot.lane.b32.xlu1 %v2094_v9, %s2003_s2  ;;  %151 = vrot.lane.b32.xlu0 %v2094_v9, %s2004_s25 }
 0x11e   :  { %159 = vrot.lane.b32.xlu1 %v2094_v9, %s2006_s26  ;;  %157 = vrot.lane.b32.xlu0 %v2096_v10, %s2006_s26 }
 0x122   :  { %238 = vrot.lane.b32.xlu1 %v2094_v9, %s2007_s27  ;;  %161 = vrot.lane.b32.xlu0 %v2096_v10, %s2007_s27 }
 0x188   :  { %v2112_v11 = vpop.permute.xlu1 %153  ;;  %v2114_v12 = vpop.permute.xlu0 %149 }
 0x189   :  { %314 = vrot.lane.b32.xlu0 %v2114_v12, %s2007_s27 }
 0x18c   :  { %v2118_v13 = vpop.permute.xlu1 %155  ;;  %v2120_v14 = vpop.permute.xlu0 %151 }
 0x18d   :  { %466 = vrot.lane.b32.xlu0 %v2112_v11, %s2007_s27  ;;  %390 = vrot.lane.b32.xlu1 %v2120_v14, %s2007_s27 }
 0x190   :  { %v2126_v15 = vpop.permute.xlu0 %157  ;;  %v2132_v16 = vpop.permute.xlu1 %159 }
 0x191   :  { %542 = vrot.lane.b32.xlu1 %v2118_v13, %s2007_s27  ;;  %618 = vrot.lane.b32.xlu0 %v2126_v15, %s2007_s27 }
 0x194   :  { %v162_v17 = vpop.permute.xlu0 %161  ;;  %v239_v18 = vpop.permute.xlu1 %238 }
 0x195   :  { %694 = vrot.lane.b32.xlu1 %v2132_v16, %s2007_s27  ;;  %1749 = vmatpush3.xpose.msk.msra.mxu1 %vm163_vm2, %v162_v17 }
 0x196   :  { %1753 = vmatprep.subr.mxu1 %v2002_v8 }
 0x198   :  { %1751 = vmatmul.mubr.msk.f32.vlgmr.msra.gmra.mrb[0].mxu1 %vm163_vm2, %v2096_v10 }
 0x199   :  { %1754 = vmatpush3.xpose.msk.msra.mxu1 %vm163_vm2, %v239_v18  ;;  %1755 = vmatprep.mubr.msk.f32.mxu1 %vm2005_vm1, %v2002_v8 }
 0x19a   :  { %1758 = vmatprep.subr.mxu1 %v2002_v8 }
 0x19c   :  { %1756 = vmatmul.mubr.msk.f32.vlgmr.msra.gmra.mrb[2].mxu1 %vm163_vm2, %v2094_v9 }
 0x19d   :  { %1760 = vmatprep.mubr.msk.f32.mxu1 %vm2005_vm1, %v2002_v8 }
 0x1fb   :  { %v315_v19 = vpop.permute.xlu0 %314 }
 0x1fc   :  { %1759 = vmatpush3.xpose.msk.msra.mxu1 %vm163_vm2, %v315_v19 }
 0x1fd   :  { %1763 = vmatprep.subr.mxu1 %v2002_v8 }
 0x1ff   :  { %v391_v20 = vpop.permute.xlu1 %390  ;;  %1761 = vmatmul.mubr.msk.f32.vlgmr.msra.gmra.mrb[4].mxu1 %vm163_vm2, %v2114_v12  ;;  %v467_v21 = vpop.permute.xlu0 %466 }
 0x200   :  { %1764 = vmatpush3.xpose.msk.msra.mxu1 %vm163_vm2, %v391_v20  ;;  %1769 = vmatpush3.xpose.msk.msra.mxu0 %vm163_vm2, %v467_v21 }
 0x201   :  { %1765 = vmatprep.mubr.msk.f32.mxu1 %vm2005_vm1, %v2002_v8  ;;  %1773 = vmatprep.subr.mxu1 %v2002_v8 }
 0x202   :  { %1778 = vmatprep.subr.mxu0 %v2002_v8 }
 0x203   :  { %v543_v22 = vpop.permute.xlu1 %542  ;;  %1766 = vmatmul.mubr.msk.f32.vlgmr.msra.gmra.mrb[6].mxu1 %vm163_vm2, %v2120_v14  ;;  %1771 = vmatmul.mubr.msk.f32.vlgmr.msra.gmra.mrb[2].mxu0 %vm163_vm2, %v2112_v11  ;;  %v619_v23 = vpop.permute.xlu0 %618 }
 0x204   :  { %1774 = vmatpush3.xpose.msk.msra.mxu1 %vm163_vm2, %v543_v22  ;;  %1779 = vmatpush3.xpose.msk.msra.mxu0 %vm163_vm2, %v619_v23 }
 0x205   :  { %1775 = vmatprep.mubr.msk.f32.mxu1 %vm2005_vm1, %v2002_v8  ;;  %1780 = vmatprep.mubr.msk.f32.mxu0 %vm2005_vm1, %v2002_v8 }
 0x206   :  { %1783 = vmatprep.subr.mxu1 %v2002_v8  ;;  %1788 = vmatprep.subr.mxu0 %v2002_v8 }
 0x207   :  { %v695_v24 = vpop.permute.xlu1 %694  ;;  %1776 = vmatmul.mubr.msk.f32.vlgmr.msra.gmra.mrb[8].mxu1 %vm163_vm2, %v2118_v13  ;;  %1781 = vmatmul.mubr.msk.f32.vlgmr.msra.gmra.mrb[4].mxu0 %vm163_vm2, %v2126_v15 }
 0x208   :  { %1784 = vmatpush3.xpose.msk.msra.mxu1 %vm163_vm2, %v695_v24  ;;  %1785 = vmatprep.mubr.msk.f32.mxu1 %vm2005_vm1, %v2002_v8 }
 0x209   :  { %1793 = vmatprep.subr.mxu1 %v2002_v8  ;;  %1790 = vmatprep.mubr.msk.f32.mxu0 %vm2005_vm1, %v2002_v8 }
 0x20b   :  { %1786 = vmatmul.mubr.msk.f32.vlgmr.msra.gmra.mrb[10].mxu1 %vm163_vm2, %v2132_v16 }
 0x20c   :  { %1795 = vmatprep.mubr.msk.f32.mxu1 %vm2005_vm1, %v2002_v8 }
 0x26b   :  { %v234_v29 = vpop.f32.mrb[0].mxu1 }
 0x26c   :  { %v777_v30 = vsel %vm2184_vm3, %v234_v29, -1e+30  ;;  %v1752_v31 = vpop.f32.mrb[1].mxu1 }
 0x26d   :  { %v785_v32 = vsel %vm163_vm2, %v777_v30, -inf }
 0x26e   :  { %786 = vmax.xlane.f32.xlu0 %v785_v32 }
 0x26f   :  { %v310_v33 = vpop.f32.mrb[2].mxu1 }
 0x270   :  { %v778_v34 = vsel %vm2184_vm3, %v310_v33, -1e+30  ;;  %v1757_v35 = vpop.f32.mrb[3].mxu1 }
 0x271   :  { %v788_v36 = vsel %vm163_vm2, %v778_v34, -inf }
 0x272   :  { %789 = vmax.xlane.f32.xlu1 %v788_v36 }
 0x2d2   :  { %v386_v37 = vpop.f32.mrb[4].mxu1 }
 0x2d3   :  { %v779_v38 = vsel %vm2184_vm3, %v386_v37, -1e+30  ;;  %v1762_v39 = vpop.f32.mrb[5].mxu1 }
 0x2d4   :  { %v791_v40 = vsel %vm163_vm2, %v779_v38, -inf }
 0x2d5   :  { %792 = vmax.xlane.f32.xlu0 %v791_v40 }
 0x2d6   :  { %v462_v41 = vpop.f32.mrb[6].mxu1  ;;  %v538_v42 = vpop.f32.mrb[2].mxu0 }
 0x2d7   :  { %v780_v43 = vsel %vm2184_vm3, %v462_v41, -1e+30  ;;  %v781_v44 = vsel %vm2184_vm3, %v538_v42, -1e+30  ;;  %v1767_v45 = vpop.f32.mrb[7].mxu1  ;;  %v1772_v46 = vpop.f32.mrb[3].mxu0 }
 0x2d8   :  { %v794_v47 = vsel %vm163_vm2, %v780_v43, -inf  ;;  %v797_v48 = vsel %vm163_vm2, %v781_v44, -inf }
 0x2d9   :  { %795 = vmax.xlane.f32.xlu0 %v794_v47  ;;  %798 = vmax.xlane.f32.xlu1 %v797_v48 }
 0x2da   :  { %v614_v49 = vpop.f32.mrb[8].mxu1  ;;  %v690_v50 = vpop.f32.mrb[4].mxu0 }
 0x2db   :  { %v782_v51 = vsel %vm2184_vm3, %v614_v49, -1e+30  ;;  %v783_v52 = vsel %vm2184_vm3, %v690_v50, -1e+30  ;;  %v1777_v53 = vpop.f32.mrb[9].mxu1  ;;  %v1782_v54 = vpop.f32.mrb[5].mxu0 }
 0x2dc   :  { %v800_v55 = vsel %vm163_vm2, %v782_v51, -inf  ;;  %v803_v56 = vsel %vm163_vm2, %v783_v52, -inf }
 0x2dd   :  { %801 = vmax.xlane.f32.xlu0 %v800_v55  ;;  %804 = vmax.xlane.f32.xlu1 %v803_v56 }
 0x2de   :  { %v766_v57 = vpop.f32.mrb[10].mxu1 }
 0x2df   :  { %v784_v58 = vsel %vm2184_vm3, %v766_v57, -1e+30  ;;  %v1787_v59 = vpop.f32.mrb[11].mxu1 }
 0x2e0   :  { %v806_v60 = vsel %vm163_vm2, %v784_v58, -inf }
 0x2e1   :  { %807 = vmax.xlane.f32.xlu0 %v806_v60 }
 0x2ee   :  { %897 = vrot.lane.b32.xlu1 %v2096_v10, %s2008_s29 }
 0x2f2   :  { %1049 = vrot.lane.b32.xlu1 %v2114_v12, %s2008_s29 }
 0x2f6   :  { %1125 = vrot.lane.b32.xlu1 %v2120_v14, %s2008_s29 }
 0x2f7   :  { %973 = vrot.lane.b32.xlu0 %v2094_v9, %s2008_s29 }
 0x2fa   :  { %1277 = vrot.lane.b32.xlu1 %v2118_v13, %s2008_s29 }
 0x2fb   :  { %1201 = vrot.lane.b32.xlu0 %v2112_v11, %s2008_s29  ;;  %v787_v63 = vpop.xlane.xlu0 %786 }
 0x2fc   :  { %v809_v0 = vsub.f32 %v777_v30, %v787_v63 }
 0x2fe   :  { %v817_v2 = vmul.f32 1.442695, %v809_v0 }
 0x2ff   :  { %v790_v61 = vpop.xlane.xlu1 %789 }
 0x300   :  { %v810_v62 = vsub.f32 %v778_v34, %v790_v61 }
 0x302   :  { %v819_v1 = vmul.f32 1.442695, %v810_v62 }
 0x304   :  { %1871 = vpow2.f32 %v819_v1 }
 0x305   :  { %1873 = vpow2.f32 %v817_v2 }
 0x30e   :  { %v2224_v3 = vpop.eup %1871 }
 0x30f   :  { %v836_v4 = vsel %vm163_vm2, %v2224_v3, 0.0  ;;  %v2228_v5 = vpop.eup %1873 }
 0x310   :  { %v833_v6 = vsel %vm163_vm2, %v2228_v5, 0.0 }
 0x31a   :  { %837 = vadd.xlane.f32.xlu0 %v836_v4 }
 0x31e   :  { %834 = vadd.xlane.f32.xlu1 %v833_v6 }
 0x362   :  { %v793_v7 = vpop.xlane.xlu0 %792 }
 0x363   :  { %v811_v9 = vsub.f32 %v779_v38, %v793_v7 }
 0x365   :  { %v821_v10 = vmul.f32 1.442695, %v811_v9 }
 0x366   :  { %v799_v11 = vpop.xlane.xlu1 %798  ;;  %v796_v12 = vpop.xlane.xlu0 %795 }
 0x367   :  { %1875 = vpow2.f32 %v821_v10  ;;  %v813_v13 = vsub.f32 %v781_v44, %v799_v11  ;;  %v812_v14 = vsub.f32 %v780_v43, %v796_v12 }
 0x369   :  { %v825_v17 = vmul.f32 1.442695, %v813_v13  ;;  %v823_v18 = vmul.f32 1.442695, %v812_v14 }
 0x36a   :  { %v805_v19 = vpop.xlane.xlu1 %804  ;;  %v802_v20 = vpop.xlane.xlu0 %801 }
 0x36b   :  { %1877 = vpow2.f32 %v825_v17  ;;  %v815_v21 = vsub.f32 %v783_v52, %v805_v19  ;;  %v814_v22 = vsub.f32 %v782_v51, %v802_v20 }
 0x36c   :  { %1879 = vpow2.f32 %v823_v18 }
 0x36d   :  { %v829_v23 = vmul.f32 1.442695, %v815_v21  ;;  %v827_v24 = vmul.f32 1.442695, %v814_v22 }
 0x36e   :  { %v898_v25 = vpop.permute.xlu1 %897  ;;  %v808_v26 = vpop.xlane.xlu0 %807 }
 0x36f   :  { %1881 = vpow2.f32 %v829_v23  ;;  %v816_v27 = vsub.f32 %v784_v58, %v808_v26  ;;  %1789 = vmatpush3.msra.mxu0 %v898_v25 }
 0x370   :  { %1883 = vpow2.f32 %v827_v24  ;;  %1798 = vmatprep.subr.mxu0 %v2002_v8 }
 0x371   :  { %v2233_v28 = vpop.eup %1875  ;;  %v831_v29 = vmul.f32 1.442695, %v816_v27 }
 0x372   :  { %v974_v30 = vpop.permute.xlu0 %973  ;;  %v839_v31 = vsel %vm163_vm2, %v2233_v28, 0.0  ;;  %v1050_v42 = vpop.permute.xlu1 %1049 }
 0x373   :  { %1885 = vpow2.f32 %v831_v29  ;;  %840 = vadd.xlane.f32.xlu1 %v839_v31  ;;  %1794 = vmatpush3.msra.mxu1 %v974_v30 }
 0x374   :  { %1803 = vmatprep.subr.mxu1 %v2002_v8 }
 0x375   :  { %v2238_v32 = vpop.eup %1877 }
 0x376   :  { %v2240_v33 = vpop.eup %1879  ;;  %v845_v34 = vsel %vm163_vm2, %v2238_v32, 0.0  ;;  %v1126_v43 = vpop.permute.xlu1 %1125 }
 0x377   :  { %846 = vadd.xlane.f32.xlu1 %v845_v34  ;;  %v842_v35 = vsel %vm163_vm2, %v2240_v33, 0.0  ;;  %v1202_v44 = vpop.permute.xlu0 %1201 }
 0x378   :  { %843 = vadd.xlane.f32.xlu0 %v842_v35 }
 0x379   :  { %v2246_v36 = vpop.eup %1881 }
 0x37a   :  { %v2248_v37 = vpop.eup %1883  ;;  %v851_v38 = vsel %vm163_vm2, %v2246_v36, 0.0  ;;  %v2262_v45 = vpop.permute.xlu1 %1277 }
 0x37b   :  { %852 = vadd.xlane.f32.xlu1 %v851_v38  ;;  %v848_v39 = vsel %vm163_vm2, %v2248_v37, 0.0  ;;  %v1538_v38 = vld [vmem:[#allocation7 + $0x8] sm:$0xff] }
 0x37c   :  { %849 = vadd.xlane.f32.xlu0 %v848_v39 }
 0x37d   :  { %v2254_v40 = vpop.eup %1885 }
 0x37e   :  { %v854_v41 = vsel %vm163_vm2, %v2254_v40, 0.0 }
 0x380   :  { %855 = vadd.xlane.f32.xlu0 %v854_v41  ;;  %v1539_v41 = vld [vmem:[#allocation7 + $0x10] sm:$0xff] }
 0x38c   :  { %1429 = vrot.lane.b32.xlu1 %v2132_v16, %s2008_s29 }
 0x396   :  { %1353 = vrot.lane.b32.xlu0 %v2126_v15, %s2008_s29 }
 0x3a7   :  { %v838_v46 = vpop.xlane.xlu0 %837 }
 0x3a8   :  { %1887 = vrcp.f32 %v838_v46 }
 0x3ab   :  { %v835_v47 = vpop.xlane.xlu1 %834 }
 0x3ac   :  { %1889 = vrcp.f32 %v835_v47 }
 0x3b2   :  { %v1888_v48 = vpop.eup %1887 }
 0x3b3   :  { %v866_v49 = vmul.f32 %v1888_v48, %v838_v46 }
 0x3b5   :  { %v874_v50 = vsub.f32 2.0, %v866_v49 }
 0x3b6   :  { %v1890_v51 = vpop.eup %1889 }
 0x3b7   :  { %v882_v52 = vmul.f32 %v1888_v48, %v874_v50  ;;  %v865_v53 = vmul.f32 %v1890_v51, %v835_v47 }
 0x3b9   :  { %v890_v16 = vmul.f32 %v2224_v3, %v882_v52  ;;  %v873_v54 = vsub.f32 2.0, %v865_v53 }
 0x3bb   :  { %v881_v55 = vmul.f32 %v1890_v51, %v873_v54  ;;  %1796 = vmatmul.mubr.msk.f32.vlgmr.msra.gmra.mrb[12].mxu1 %vm163_vm2, %v890_v16 }
 0x3bc   :  { %1804 = vmatpush3.msra.mxu1 %v1126_v43  ;;  %1805 = vmatprep.mubr.msk.f32.mxu1 %vm2005_vm1, %v2002_v8 }
 0x3bd   :  { %v889_v15 = vmul.f32 %v2228_v5, %v881_v55  ;;  %1813 = vmatprep.subr.mxu1 %v2002_v8 }
 0x3bf   :  { %1791 = vmatmul.mubr.msk.f32.vlgmr.msra.gmra.mrb[6].mxu0 %vm163_vm2, %v889_v15 }
 0x3c0   :  { %1799 = vmatpush3.msra.mxu0 %v1050_v42  ;;  %1800 = vmatprep.mubr.msk.f32.mxu0 %vm2005_vm1, %v2002_v8  ;;  %v1540_v42 = vld [vmem:[#allocation7 + $0x18] sm:$0xff] }
 0x3c1   :  { %1808 = vmatprep.subr.mxu0 %v2002_v8  ;;  %v1851_v43 = vpack.c.bf16 %v1540_v42, %v1539_v41 }
 0x400   :  { %v841_v56 = vpop.xlane.xlu1 %840 }
 0x401   :  { %1891 = vrcp.f32 %v841_v56 }
 0x404   :  { %v847_v57 = vpop.xlane.xlu1 %846 }
 0x405   :  { %1893 = vrcp.f32 %v847_v57  ;;  %v844_v58 = vpop.xlane.xlu0 %843 }
 0x406   :  { %1895 = vrcp.f32 %v844_v58 }
 0x408   :  { %v853_v59 = vpop.xlane.xlu1 %852 }
 0x409   :  { %1897 = vrcp.f32 %v853_v59  ;;  %v850_v60 = vpop.xlane.xlu0 %849 }
 0x40a   :  { %1899 = vrcp.f32 %v850_v60 }
 0x40b   :  { %v1892_v61 = vpop.eup %1891 }
 0x40c   :  { %v867_v62 = vmul.f32 %v1892_v61, %v841_v56  ;;  %v1430_v30 = vpop.permute.xlu1 %1429 }
 0x40d   :  { %v856_v63 = vpop.xlane.xlu0 %855 }
 0x40e   :  { %v875_v0 = vsub.f32 2.0, %v867_v62  ;;  %1901 = vrcp.f32 %v856_v63 }
 0x40f   :  { %v1894_v1 = vpop.eup %1893 }
 0x410   :  { %v1896_v2 = vpop.eup %1895  ;;  %v883_v3 = vmul.f32 %v1892_v61, %v875_v0  ;;  %v869_v4 = vmul.f32 %v1894_v1, %v847_v57  ;;  %v1690_v0 = vld [vmem:[%s2324_s3] ss:$0 sm:$0xff]  ;;  %s1969_s3 = scalar_lea.vmem %s1655_s9, 64 }
 0x411   :  { %v868_v5 = vmul.f32 %v1896_v2, %v844_v58  ;;  %v1354_v24 = vpop.permute.xlu0 %1353  ;;  %p1970_p10 = scmp.ne.s32.totalorder %s1655_s9, %s1969_s3  ;;  %p1975_p12 = scmp.lt.s32.totalorder %s1969_s3, %s1969_s3 }
 0x412   :  { %v891_v6 = vmul.f32 %v2233_v28, %v883_v3  ;;  %v877_v7 = vsub.f32 2.0, %v869_v4 }
 0x413   :  { %v1898_v9 = vpop.eup %1897  ;;  %v876_v10 = vsub.f32 2.0, %v868_v5  ;;  %p1976_p13 = por %p1975_p12, %p1974_p11 }
 0x414   :  { %v1900_v11 = vpop.eup %1899  ;;  %v885_v12 = vmul.f32 %v1894_v1, %v877_v7  ;;  %v871_v13 = vmul.f32 %v1898_v9, %v853_v59  ;;  %1801 = vmatmul.mubr.msk.f32.vlgmr.msra.gmra.mrb[8].mxu0 %vm163_vm2, %v891_v6 }
 0x415   :  { %v884_v14 = vmul.f32 %v1896_v2, %v876_v10  ;;  %v870_v17 = vmul.f32 %v1900_v11, %v850_v60  ;;  %1809 = vmatpush3.msra.mxu0 %v1202_v44  ;;  %1810 = vmatprep.mubr.msk.f32.mxu0 %vm2005_vm1, %v2002_v8  ;;  %p1977_p0 = pnand %p1976_p13, %p1970_p10 }
 0x416   :  { %v893_v18 = vmul.f32 %v2238_v32, %v885_v12  ;;  %v879_v19 = vsub.f32 2.0, %v871_v13  ;;  %1818 = vmatprep.subr.mxu0 %v2002_v8 }
 0x417   :  { %v892_v20 = vmul.f32 %v2240_v33, %v884_v14  ;;  %v878_v21 = vsub.f32 2.0, %v870_v17 }
 0x418   :  { %v1902_v22 = vpop.eup %1901  ;;  %v887_v23 = vmul.f32 %v1898_v9, %v879_v19  ;;  %1811 = vmatmul.mubr.msk.f32.vlgmr.msra.gmra.mrb[10].mxu0 %vm163_vm2, %v893_v18 }
 0x419   :  { %v886_v25 = vmul.f32 %v1900_v11, %v878_v21  ;;  %v872_v26 = vmul.f32 %v1902_v22, %v856_v63  ;;  %1806 = vmatmul.mubr.msk.f32.vlgmr.msra.gmra.mrb[14].mxu1 %vm163_vm2, %v892_v20  ;;  %1819 = vmatpush3.msra.mxu0 %v1354_v24 }
 0x41a   :  { %v895_v27 = vmul.f32 %v2246_v36, %v887_v23  ;;  %1814 = vmatpush3.msra.mxu1 %v2262_v45  ;;  %1815 = vmatprep.mubr.msk.f32.mxu1 %vm2005_vm1, %v2002_v8 }
 0x41b   :  { %v894_v28 = vmul.f32 %v2248_v37, %v886_v25  ;;  %v880_v29 = vsub.f32 2.0, %v872_v26  ;;  %1820 = vmatprep.mubr.msk.f32.mxu0 %vm2005_vm1, %v2002_v8  ;;  %1823 = vmatprep.subr.mxu1 %v2002_v8  ;;  %v1537_v37 = vld [vmem:[#allocation7] sm:$0xff] }
 0x41c   :  { %1821 = vmatmul.mubr.msk.f32.vlgmr.msra.gmra.mrb[12].mxu0 %vm163_vm2, %v895_v27  ;;  %v1847_v39 = vpack.c.bf16 %v1538_v38, %v1537_v37 }
 0x41d   :  { %v888_v31 = vmul.f32 %v1902_v22, %v880_v29  ;;  %1816 = vmatmul.mubr.msk.f32.vlgmr.msra.gmra.mrb[16].mxu1 %vm163_vm2, %v894_v28 }
 0x41e   :  { %1824 = vmatpush3.msra.mxu1 %v1430_v30  ;;  %1825 = vmatprep.mubr.msk.f32.mxu1 %vm2005_vm1, %v2002_v8 }
 0x41f   :  { %v896_v32 = vmul.f32 %v2254_v40, %v888_v31  ;;  %1848 = vmatprep.subr.bf16.mxu0 %v1847_v39 }
 0x420   :  { %1850 = vmatpush3.bf16.msra.mxu0 %v1847_v39 }
 0x421   :  { %1826 = vmatmul.mubr.msk.f32.vlgmr.msra.gmra.mrb[18].mxu1 %vm163_vm2, %v896_v32  ;;  %1852 = vmatprep.subr.bf16.mxu0 %v1851_v43 }
 0x424   :  { %1854 = vmatpush3.bf16.msra.mxu0 %v1851_v43 }
 0x48e   :  { %v1045_v33 = vpop.f32.mrb[12].mxu1 }
 0x48f   :  { %v1797_v34 = vpop.f32.mrb[13].mxu1 }
 0x492   :  { %v969_v35 = vpop.f32.mrb[6].mxu0 }
 0x493   :  { %v1792_v36 = vpop.f32.mrb[7].mxu0 }
 0x4e7   :  { %v1121_v44 = vpop.f32.mrb[8].mxu0 }
 0x4e8   :  { %v1802_v8 = vpop.f32.mrb[9].mxu0  ;;  %1507 = vrot.lane.b32.xlu0 %v1121_v44, %s2000_s28 }
 0x4eb   :  { %v1273_v40 = vpop.f32.mrb[10].mxu0 }
 0x4ec   :  { %v1197_v45 = vpop.f32.mrb[14].mxu1  ;;  %1515 = vrot.lane.b32.xlu0 %v1273_v40, %s2009_s30  ;;  %v1812_v46 = vpop.f32.mrb[11].mxu0 }
 0x4ed   :  { %1509 = vrot.lane.b32.xlu1 %v1197_v45, %s2000_s28  ;;  %v1807_v47 = vpop.f32.mrb[15].mxu1 }
 0x4ef   :  { %v1425_v48 = vpop.f32.mrb[12].mxu0 }
 0x4f0   :  { %v1349_v49 = vpop.f32.mrb[16].mxu1  ;;  %1523 = vrot.lane.b32.xlu0 %v1425_v48, %s2010_s5  ;;  %v1822_v50 = vpop.f32.mrb[13].mxu0 }
 0x4f1   :  { %1517 = vrot.lane.b32.xlu1 %v1349_v49, %s2009_s30  ;;  %v1817_v51 = vpop.f32.mrb[17].mxu1 }
 0x4f4   :  { %v1501_v52 = vpop.f32.mrb[18].mxu1 }
 0x4f5   :  { %1525 = vrot.lane.b32.xlu1 %v1501_v52, %s2010_s5  ;;  %v1827_v53 = vpop.f32.mrb[19].mxu1 }
 0x55a   :  { %v1508_v16 = vpop.permute.xlu0 %1507 }
 0x55b   :  { %v1529_v15 = vsel %vm163_vm2, %v969_v35, %v1508_v16 }
 0x55e   :  { %v1516_v54 = vpop.permute.xlu0 %1515 }
 0x55f   :  { %v1510_v55 = vpop.permute.xlu1 %1509  ;;  %v1532_v56 = vsel %vm1531_vm4, %v1529_v15, %v1516_v54 }
 0x560   :  { %v1530_v60 = vsel %vm163_vm2, %v1045_v33, %v1510_v55 }
 0x562   :  { %v1524_v57 = vpop.permute.xlu0 %1523 }
 0x563   :  { %v1518_v58 = vpop.permute.xlu1 %1517  ;;  %v1535_v59 = vsel %vm1534_vm5, %v1532_v56, %v1524_v57 }
 0x564   :  { %1836 = vmatprep.mubr.msk.f32.mxu0 %vm65_vm0, %v1535_v59  ;;  %v1533_v61 = vsel %vm1531_vm4, %v1530_v60, %v1518_v58 }
 0x567   :  { %v1526_v62 = vpop.permute.xlu1 %1525 }
 0x568   :  { %v1536_v63 = vsel %vm1534_vm5, %v1533_v61, %v1526_v62 }
 0x569   :  { %1837 = vmatmul.mubr.msk.f32.vlgmr.msra.gmra.mrb[14].mxu0 %vm65_vm0, %v1536_v63 }
 0x63c   :  { %v1838_v1 = vpop.f32.mrb[14].mxu0 }
 0x63d   :  { %v1626_v2 = vadd.f32 %v1838_v1, %v1690_v0  ;;  %v1620_v3 = vpop.f32.mrb[15].mxu0 }
 0x63e   :  { %v1621_v4 = vadd.f32 %v1690_v0, %v1620_v3 }
 0x63f   :  { %1635 = vrot.lane.b32.xlu1 %v1626_v2, %s2008_s29  ;;  %v1638_v6 = vrot.slane %v1626_v2, 4 }
 0x640   :  { %v1630_v5 = vrot.slane %v1621_v4, 4 }
 0x642   :  { %1631 = vrot.lane.b32.xlu0 %v1630_v5, %s2011_s7 }
 0x646   :  { %1639 = vrot.lane.b32.xlu0 %v1638_v6, %s2007_s27 }
 0x6b1   :  { %v1636_v10 = vpop.permute.xlu1 %1635 }
 0x6b4   :  { %v1632_v7 = vpop.permute.xlu0 %1631 }
 0x6b5   :  { %v1642_v9 = vsel %vm65_vm0, %v1621_v4, %v1632_v7 }
 0x6b6   :  { %v1644_v11 = vsel %vm1643_vm6, %v1642_v9, %v1636_v10 }
 0x6b8   :  { %v1640_v12 = vpop.permute.xlu0 %1639 }
 0x6b9   :  { %v1646_v13 = vsel %vm1645_vm7, %v1644_v11, %v1640_v12 }
 0x6ba   :  { %1647 = vst [vmem:[#allocation8] sm:$0xf] %v1646_v13 }
 0x6bb   :  { %1980 = shalt.err (!%p1977_p0)
}
 0x6bc   :  { %s1981_s12 = scalar_lea.hbm %s2325_s4, 64 }
 0x6bd   :  { %p1982_p1 = scmp.ne.s32.totalorder %s2325_s4, %s1981_s12  ;;  %p1985_p2 = scmp.lt.u32.totalorder %s1981_s12, %s2325_s4 }
 0x6bf   :  { %p1987_p3 = pnand %p1985_p2, %p1982_p1 }
 0x6c1   :  { %1990 = shalt.err (!%p1987_p3)
}
 0x6c2   :  { %1657 = dma.vmem_to_hbm [thread:$0]  %s1655_s9, 64, %s2325_s4, [#allocation4]  }
 0x6c3   :  { %1995 = dma.done.wait [#allocation4], 64  }
 0x6c4   :  { %1996 = vsyncadd [#allocation4], 4294967232 }
 0x6c5   :  { %1661 = vsyncpa [#allocation3], 1 }
 0x6c6   :  { %1662 = vsyncpa [#allocation6], 1 }
 0x6c7   :  { %1663 = vsyncpa [#allocation4], 1 }

</bundles_post_ra>
